<compile_context>
chip_gen: v6e
topology: v6e:2x2x1
jax: 0.10.0
libtpu: 0.0.40
codegen_flags: <defaults>
</compile_context>

<pallas_src>
import functools
import math

import jax
import jax.numpy as jnp
from jax.experimental import pallas as pl
from jax.experimental.pallas import tpu as pltpu


# --------------------------------------------------------------------------
# In-kernel channel-attention math (VPU / XLU only, no MXU, no transposes)
# --------------------------------------------------------------------------
def _channel_attention(pooled, conv_t, wfc_t, conv_mat, bfc_row, wmix_ref):
    """pooled: (C, 1) f32 -> att: (C, 1) f32.

    Matvecs are done as broadcast-multiply + reductions:
      * (C,C).T laid out as (C, 2C-ish) * pooled(C,1)  -> sublane reduce -> (1,C)
      * conv_mat(C,C) * mixed(1,C)                     -> lane reduce    -> (C,1)
    so the data never needs a lane<->sublane transpose and the tiny matvecs
    stay off the MXU.
    """
    # x1 = Conv1d(pooled) over channels, x2 = 1x1 Conv2d (fc) of pooled.
    x1 = jnp.sum(conv_t * pooled, axis=0, keepdims=True)            # (1, C)
    x2 = jnp.sum(wfc_t * pooled, axis=0, keepdims=True) + bfc_row   # (1, C)
    # sum(matmul(x1, x2), dim=1)[j]   == (sum_i x1_i) * x2_j
    # sum(matmul(x2^T, x1^T), dim=1)[j] == (sum_i x2_i) * x1_j
    s1 = jnp.sum(x1, axis=-1, keepdims=True)                        # (1, 1)
    s2 = jnp.sum(x2, axis=-1, keepdims=True)                        # (1, 1)
    out1 = jax.nn.sigmoid(s1 * x2)                                  # (1, C)
    out2 = jax.nn.sigmoid(s2 * x1)                                  # (1, C)
    m = jax.nn.sigmoid(jnp.full_like(out1, wmix_ref[0]))            # Mix factor
    mixed = m * out1 + (1.0 - m) * out2                             # (1, C)
    # att[c] = sigmoid( sum_j conv_mat[c, j] * mixed[j] )  -> (C, 1)
    att = jax.nn.sigmoid(
        jnp.sum(conv_mat * mixed, axis=-1, keepdims=True))
    return att


# --------------------------------------------------------------------------
# Kernels
# --------------------------------------------------------------------------
def _fused_kernel(x_ref, convt_ref, wfct_ref, conv_ref, bfc_ref, wmix_ref,
                  o_ref, *, inv_spatial):
    """Single-pass: pool -> channel attention -> scale, one (C, S) slab/batch."""
    xb = x_ref[0]                                                   # (C, S)
    pooled = jnp.sum(xb.astype(jnp.float32), axis=-1,
                     keepdims=True) * inv_spatial                   # (C, 1)
    att = _channel_attention(pooled, convt_ref[...], wfct_ref[...],
                             conv_ref[...], bfc_ref[...], wmix_ref)
    o_ref[0] = (xb.astype(jnp.float32) * att).astype(o_ref.dtype)


def _att_kernel(x_ref, convt_ref, wfct_ref, conv_ref, bfc_ref, wmix_ref,
                att_ref, acc_ref, *, spatial, inv_spatial):
    """Per-batch spatial-sum reduction + channel-attention finalize."""
    s = pl.program_id(1)
    n_s = pl.num_programs(1)

    @pl.when(s == 0)
    def _():
        acc_ref[...] = jnp.zeros_like(acc_ref)

    xb = x_ref[0].astype(jnp.float32)                               # (C, T)
    C, tile = xb.shape

    if spatial % tile != 0:
        # Only the tail tile needs masking; full tiles accumulate unmasked.
        @pl.when(s < n_s - 1)
        def _():
            acc_ref[...] += jnp.sum(xb, axis=-1, keepdims=True)

        @pl.when(s == n_s - 1)
        def _():
            lane = jax.lax.broadcasted_iota(jnp.int32, (C, tile), 1)
            xm = jnp.where(s * tile + lane < spatial, xb, 0.0)
            acc_ref[...] += jnp.sum(xm, axis=-1, keepdims=True)
    else:
        acc_ref[...] += jnp.sum(xb, axis=-1, keepdims=True)

    @pl.when(s == n_s - 1)
    def _():
        pooled = acc_ref[...] * inv_spatial                         # avg pool
        att_ref[0] = _channel_attention(pooled, convt_ref[...], wfct_ref[...],
                                        conv_ref[...], bfc_ref[...], wmix_ref)


def _scale_kernel(x_ref, att_ref, o_ref):
    """y = x * att, att broadcast over the lane (spatial) axis."""
    o_ref[...] = (x_ref[...].astype(jnp.float32)
                  * att_ref[...]).astype(o_ref.dtype)               # (1,C,T)*(1,C,1)


# --------------------------------------------------------------------------
# Wrapper
# --------------------------------------------------------------------------
def conv1d_as_matrix(w_conv, channels):
    """(C, C) matrix M with (M @ v) == Conv1d(1,1,k,pad=k//2,bias=False)(v)."""
    w = jnp.asarray(w_conv, jnp.float32).reshape(-1)
    k = w.shape[0]
    pad = k // 2
    rows = jnp.broadcast_to(jnp.arange(channels)[:, None], (channels, k))
    src = rows + jnp.arange(k)[None, :] - pad
    valid = (src >= 0) & (src < channels)
    vals = jnp.where(valid, jnp.broadcast_to(w[None, :], (channels, k)), 0.0)
    mat = jnp.zeros((channels, channels), jnp.float32)
    mat = mat.at[rows, jnp.clip(src, 0, channels - 1)].add(vals)
    return mat


def _pick_spatial_tile(S, C, target_bytes=4 << 20):
    """Lane-dense spatial tile: full extent when small; otherwise the largest
    multiple of 128 <= ~4 MiB/block (f32 budget) that divides S (tail-free),
    falling back to the cap itself if no divisor exists."""
    if S <= 1024:
        return S
    per_lane_bytes = 4 * C                       # budget in f32 (upcast temps)
    cap = max(128, (target_bytes // per_lane_bytes) // 128 * 128)
    cap = min(cap, (S // 128) * 128)
    t = cap
    while t >= 128:
        if S % t == 0:
            return t                             # divides S -> no tail tile
        t -= 128
    return cap


def attention_forward(x_nchw, w_conv, w_fc, b_fc, w_mix, *,
                      fused_slab_bytes=4 << 20, spatial_tile=None):
    """x_nchw: (B, C, H, W), f32 or bf16 (PyTorch layout). Returns NCHW output."""
    B, C, H, W = x_nchw.shape
    S = H * W
    dtype = x_nchw.dtype
    itemsize = jnp.dtype(dtype).itemsize
    x = x_nchw.reshape(B, C, S)                  # free row-major view

    conv_mat = conv1d_as_matrix(w_conv, C)                        # (C, C)
    conv_t = conv_mat.T                                           # (C, C)
    wfc_t = jnp.asarray(w_fc, jnp.float32).reshape(C, C).T        # (C, C)
    bfc_row = jnp.asarray(b_fc, jnp.float32).reshape(1, C)
    wmix = jnp.asarray(w_mix, jnp.float32).reshape(1)

    weight_specs_1 = [
        pl.BlockSpec((C, C), lambda b: (0, 0)),                   # conv1d^T
        pl.BlockSpec((C, C), lambda b: (0, 0)),                   # fc^T
        pl.BlockSpec((C, C), lambda b: (0, 0)),                   # conv1d
        pl.BlockSpec((1, C), lambda b: (0, 0)),                   # fc bias
        pl.BlockSpec(memory_space=pltpu.MemorySpace.SMEM),        # mix scalar
    ]
    weight_specs_2 = [
        pl.BlockSpec((C, C), lambda b, s: (0, 0)),
        pl.BlockSpec((C, C), lambda b, s: (0, 0)),
        pl.BlockSpec((C, C), lambda b, s: (0, 0)),
        pl.BlockSpec((1, C), lambda b, s: (0, 0)),
        pl.BlockSpec(memory_space=pltpu.MemorySpace.SMEM),
    ]

    # ---------------- Fused fast path: one HBM read + one write -----------
    if C * S * 4 <= fused_slab_bytes and spatial_tile is None:
        y = pl.pallas_call(
            functools.partial(_fused_kernel, inv_spatial=1.0 / float(S)),
            out_shape=jax.ShapeDtypeStruct((B, C, S), dtype),
            grid=(B,),
            in_specs=[pl.BlockSpec((1, C, S), lambda b: (b, 0, 0))]
                     + weight_specs_1,
            out_specs=pl.BlockSpec((1, C, S), lambda b: (b, 0, 0)),
            compiler_params=pltpu.CompilerParams(
                dimension_semantics=("parallel",),
                vmem_limit_bytes=40 << 20),
            cost_estimate=pl.CostEstimate(
                flops=2 * B * C * S,
                transcendentals=3 * B * C,
                bytes_accessed=2 * B * C * S * itemsize),
        )(x, conv_t, wfc_t, conv_mat, bfc_row, wmix)
        return y.reshape(B, C, H, W)

    # ---------------- Two-pass fallback for large C*S ---------------------
    t_s = spatial_tile if spatial_tile is not None else _pick_spatial_tile(S, C)
    n_s = pl.cdiv(S, t_s)

    # Pass 1: per-channel attention weights (B, C, 1).
    att = pl.pallas_call(
        functools.partial(_att_kernel, spatial=S, inv_spatial=1.0 / float(S)),
        out_shape=jax.ShapeDtypeStruct((B, C, 1), jnp.float32),
        grid=(B, n_s),
        in_specs=[pl.BlockSpec((1, C, t_s), lambda b, s: (b, 0, s))]
                 + weight_specs_2,
        out_specs=pl.BlockSpec((1, C, 1), lambda b, s: (b, 0, 0)),
        scratch_shapes=[pltpu.VMEM((C, 1), jnp.float32)],
        compiler_params=pltpu.CompilerParams(
            dimension_semantics=("parallel", "arbitrary"),
            vmem_limit_bytes=32 << 20),
        cost_estimate=pl.CostEstimate(
            flops=B * C * S,
            transcendentals=3 * B * C,
            bytes_accessed=B * C * S * itemsize),
    )(x, conv_t, wfc_t, conv_mat, bfc_row, wmix)

    # Pass 2: bandwidth-bound broadcast-scale, lane-dense, all-parallel grid.
    y = pl.pallas_call(
        _scale_kernel,
        out_shape=jax.ShapeDtypeStruct((B, C, S), dtype),
        grid=(B, n_s),
        in_specs=[
            pl.BlockSpec((1, C, t_s), lambda b, s: (b, 0, s)),
            pl.BlockSpec((1, C, 1), lambda b, s: (b, 0, 0)),
        ],
        out_specs=pl.BlockSpec((1, C, t_s), lambda b, s: (b, 0, s)),
        compiler_params=pltpu.CompilerParams(
            dimension_semantics=("parallel", "parallel"),
            vmem_limit_bytes=32 << 20),
        cost_estimate=pl.CostEstimate(
            flops=B * C * S,
            transcendentals=0,
            bytes_accessed=2 * B * C * S * itemsize),
    )(x, att)

    return y.reshape(B, C, H, W)


# --------------------------------------------------------------------------
# Pure-JAX reference (NCHW), mirrors the PyTorch module
# --------------------------------------------------------------------------
def attention_reference(x_nchw, w_conv, w_fc, b_fc, w_mix):
    B, C, H, W = x_nchw.shape
    x = x_nchw.astype(jnp.float32)
    pooled = jnp.mean(x, axis=(2, 3))                               # (B, C)
    conv_mat = conv1d_as_matrix(w_conv, C)
    x1 = pooled @ conv_mat.T
    x2 = pooled @ jnp.asarray(w_fc, jnp.float32).T + b_fc
    out1 = jax.nn.sigmoid(jnp.sum(x1, axis=1, keepdims=True) * x2)
    out2 = jax.nn.sigmoid(jnp.sum(x2, axis=1, keepdims=True) * x1)
    m = jax.nn.sigmoid(w_mix)
    mixed = m * out1 + (1.0 - m) * out2
    att = jax.nn.sigmoid(mixed @ conv_mat.T)
    return x * att[:, :, None, None]


if __name__ == "__main__":
    def _make_params(C, key):
        b_hyper, gamma = 1, 2
        t = int(abs((math.log(C, 2) + b_hyper) / gamma))
        k = t if t % 2 else t + 1                        # C=8 -> k=3, pad=1
        kc, kw, kb = jax.random.split(key, 3)
        w_conv = jax.random.normal(kc, (k,), jnp.float32) * 0.5
        w_fc = jax.random.normal(kw, (C, C), jnp.float32) * (1.0 / math.sqrt(C))
        b_fc = jax.random.normal(kb, (C,), jnp.float32) * 0.1
        w_mix = jnp.float32(-0.8)
        return w_conv, w_fc, b_fc, w_mix

    key = jax.random.PRNGKey(0)
    kx1, kp1, kx2, kp2, kx3, kp3 = jax.random.split(key, 6)

    # Case 1: fused fast path (f32).  B=2, C=8, 16x16 -> S=256, one slab/batch.
    B, C, H, W = 2, 8, 16, 16
    x = jax.random.normal(kx1, (B, C, H, W), jnp.float32)
    w_conv, w_fc, b_fc, w_mix = _make_params(C, kp1)
    out = jax.block_until_ready(attention_forward(x, w_conv, w_fc, b_fc, w_mix))
    ref = attention_reference(x, w_conv, w_fc, b_fc, w_mix)
    assert out.shape == x.shape and out.dtype == jnp.float32
    assert jnp.allclose(out, ref, atol=1e-5, rtol=1e-5), \
        float(jnp.max(jnp.abs(out - ref)))

    # Case 2: forced two-pass path with a masked tail.  S=400, tile=128 ->
    # 4 spatial tiles, 16 valid lanes in the tail (multi-tile reduction + mask).
    B, C, H, W = 2, 8, 20, 20
    x = jax.random.normal(kx2, (B, C, H, W), jnp.float32)
    w_conv, w_fc, b_fc, w_mix = _make_params(C, kp2)
    out = jax.block_until_ready(attention_forward(
        x, w_conv, w_fc, b_fc, w_mix, fused_slab_bytes=0, spatial_tile=128))
    ref = attention_reference(x, w_conv, w_fc, b_fc, w_mix)
    assert jnp.allclose(out, ref, atol=1e-5, rtol=1e-5), \
        float(jnp.max(jnp.abs(out - ref)))

    # Case 3: forced two-pass path, tail-free tiling.  S=512, tile=128.
    B, C, H, W = 2, 8, 16, 32
    x = jax.random.normal(kx3, (B, C, H, W), jnp.float32)
    w_conv, w_fc, b_fc, w_mix = _make_params(C, kp3)
    out = jax.block_until_ready(attention_forward(
        x, w_conv, w_fc, b_fc, w_mix, fused_slab_bytes=0, spatial_tile=128))
    ref = attention_reference(x, w_conv, w_fc, b_fc, w_mix)
    assert jnp.allclose(out, ref, atol=1e-5, rtol=1e-5), \
        float(jnp.max(jnp.abs(out - ref)))

    # Case 4: bf16 streaming through the fused path (f32 accumulate/math).
    B, C, H, W = 2, 8, 16, 16
    x_bf = jax.random.normal(kx1, (B, C, H, W), jnp.float32).astype(jnp.bfloat16)
    w_conv, w_fc, b_fc, w_mix = _make_params(C, kp1)
    out_bf = jax.block_until_ready(
        attention_forward(x_bf, w_conv, w_fc, b_fc, w_mix))
    assert out_bf.dtype == jnp.bfloat16 and out_bf.shape == x_bf.shape
    ref_bf = attention_reference(x_bf, w_conv, w_fc, b_fc, w_mix)
    assert jnp.allclose(out_bf.astype(jnp.float32), ref_bf,
                        atol=3e-2, rtol=3e-2), \
        float(jnp.max(jnp.abs(out_bf.astype(jnp.float32) - ref_bf)))

    print("KERNEL_OK")
</pallas_src>

<mosaic_0001>
module attributes {stable_mosaic.version = 11 : i64} {
  func.func @_fused_kernel(%arg0: i32, %arg1: memref<1x8x256xf32, #tpu.memory_space<vmem>>, %arg2: memref<8x8xf32, #tpu.memory_space<vmem>>, %arg3: memref<8x8xf32, #tpu.memory_space<vmem>>, %arg4: memref<8x8xf32, #tpu.memory_space<vmem>>, %arg5: memref<1x8xf32, #tpu.memory_space<vmem>>, %arg6: memref<1xf32, #tpu.memory_space<smem>>, %arg7: memref<1x8x256xf32, #tpu.memory_space<vmem>>) attributes {dimension_semantics = [#tpu.dimension_semantics<parallel>], iteration_bounds = array<i64: 2>, scalar_prefetch = 0 : i64, scratch_operands = 0 : i64, tpu.core_type = #tpu.core_type<tc>, window_params = [{transform_indices = @transform_0, window_bounds = array<i64: 1, 8, 256>}, {pipeline_mode = #tpu.pipeline_mode<synchronous>, transform_indices = @transform_1, window_bounds = array<i64: 8, 8>}, {pipeline_mode = #tpu.pipeline_mode<synchronous>, transform_indices = @transform_2, window_bounds = array<i64: 8, 8>}, {pipeline_mode = #tpu.pipeline_mode<synchronous>, transform_indices = @transform_3, window_bounds = array<i64: 8, 8>}, {pipeline_mode = #tpu.pipeline_mode<synchronous>, transform_indices = @transform_4, window_bounds = array<i64: 1, 8>}, {transform_indices = @transform_5, window_bounds = array<i64: 1>}, {transform_indices = @transform_6, window_bounds = array<i64: 1, 8, 256>}]} {
    %c0 = arith.constant 0 : index
    %c0_0 = arith.constant 0 : index
    %c0_1 = arith.constant 0 : index
    %0 = vector.load %arg1[%c0, %c0_0, %c0_1] : memref<1x8x256xf32, #tpu.memory_space<vmem>>, vector<1x8x256xf32>
    %1 = vector.shape_cast %0 : vector<1x8x256xf32> to vector<8x256xf32>
    %cst = arith.constant dense<0.000000e+00> : vector<8xf32>
    %2 = vector.multi_reduction <add>, %1, %cst [1] : vector<8x256xf32> to vector<8xf32>
    %3 = vector.shape_cast %2 : vector<8xf32> to vector<8x1xf32>
    %cst_2 = arith.constant 3.906250e-03 : f32
    %4 = vector.broadcast %cst_2 : f32 to vector<8x1xf32>
    %5 = arith.mulf %3, %4 : vector<8x1xf32>
    %c0_3 = arith.constant 0 : index
    %c0_4 = arith.constant 0 : index
    %6 = vector.load %arg2[%c0_3, %c0_4] : memref<8x8xf32, #tpu.memory_space<vmem>>, vector<8x8xf32>
    %c0_5 = arith.constant 0 : index
    %c0_6 = arith.constant 0 : index
    %7 = vector.load %arg3[%c0_5, %c0_6] : memref<8x8xf32, #tpu.memory_space<vmem>>, vector<8x8xf32>
    %c0_7 = arith.constant 0 : index
    %c0_8 = arith.constant 0 : index
    %8 = vector.load %arg4[%c0_7, %c0_8] : memref<8x8xf32, #tpu.memory_space<vmem>>, vector<8x8xf32>
    %c0_9 = arith.constant 0 : index
    %c0_10 = arith.constant 0 : index
    %9 = vector.load %arg5[%c0_9, %c0_10] : memref<1x8xf32, #tpu.memory_space<vmem>>, vector<1x8xf32>
    %10 = vector.broadcast %5 : vector<8x1xf32> to vector<8x8xf32>
    %11 = arith.mulf %6, %10 : vector<8x8xf32>
    %cst_11 = arith.constant dense<0.000000e+00> : vector<8xf32>
    %12 = vector.multi_reduction <add>, %11, %cst_11 [0] : vector<8x8xf32> to vector<8xf32>
    %13 = vector.shape_cast %12 : vector<8xf32> to vector<1x8xf32>
    %14 = vector.broadcast %5 : vector<8x1xf32> to vector<8x8xf32>
    %15 = arith.mulf %7, %14 : vector<8x8xf32>
    %cst_12 = arith.constant dense<0.000000e+00> : vector<8xf32>
    %16 = vector.multi_reduction <add>, %15, %cst_12 [0] : vector<8x8xf32> to vector<8xf32>
    %17 = vector.shape_cast %16 : vector<8xf32> to vector<1x8xf32>
    %18 = arith.addf %17, %9 : vector<1x8xf32>
    %cst_13 = arith.constant dense<0.000000e+00> : vector<1xf32>
    %19 = vector.multi_reduction <add>, %13, %cst_13 [1] : vector<1x8xf32> to vector<1xf32>
    %20 = vector.shape_cast %19 : vector<1xf32> to vector<1x1xf32>
    %cst_14 = arith.constant dense<0.000000e+00> : vector<1xf32>
    %21 = vector.multi_reduction <add>, %18, %cst_14 [1] : vector<1x8xf32> to vector<1xf32>
    %22 = vector.shape_cast %21 : vector<1xf32> to vector<1x1xf32>
    %23 = vector.broadcast %20 : vector<1x1xf32> to vector<1x8xf32>
    %24 = arith.mulf %23, %18 : vector<1x8xf32>
    %25 = arith.negf %24 : vector<1x8xf32>
    %26 = math.exp %25 : vector<1x8xf32>
    %cst_15 = arith.constant 1.000000e+00 : f32
    %27 = vector.broadcast %cst_15 : f32 to vector<1x8xf32>
    %28 = arith.addf %27, %26 : vector<1x8xf32>
    %29 = arith.divf %27, %28 : vector<1x8xf32>
    %30 = vector.broadcast %22 : vector<1x1xf32> to vector<1x8xf32>
    %31 = arith.mulf %30, %13 : vector<1x8xf32>
    %32 = arith.negf %31 : vector<1x8xf32>
    %33 = math.exp %32 : vector<1x8xf32>
    %cst_16 = arith.constant 1.000000e+00 : f32
    %34 = vector.broadcast %cst_16 : f32 to vector<1x8xf32>
    %35 = arith.addf %34, %33 : vector<1x8xf32>
    %36 = arith.divf %34, %35 : vector<1x8xf32>
    %c0_17 = arith.constant 0 : index
    %37 = memref.load %arg6[%c0_17] : memref<1xf32, #tpu.memory_space<smem>>
    %38 = vector.broadcast %37 : f32 to vector<1x8xf32>
    %39 = arith.negf %38 : vector<1x8xf32>
    %40 = math.exp %39 : vector<1x8xf32>
    %cst_18 = arith.constant 1.000000e+00 : f32
    %41 = vector.broadcast %cst_18 : f32 to vector<1x8xf32>
    %42 = arith.addf %41, %40 : vector<1x8xf32>
    %43 = arith.divf %41, %42 : vector<1x8xf32>
    %44 = arith.mulf %43, %29 : vector<1x8xf32>
    %cst_19 = arith.constant 1.000000e+00 : f32
    %45 = vector.broadcast %cst_19 : f32 to vector<1x8xf32>
    %46 = arith.subf %45, %43 : vector<1x8xf32>
    %47 = arith.mulf %46, %36 : vector<1x8xf32>
    %48 = arith.addf %44, %47 : vector<1x8xf32>
    %49 = vector.broadcast %48 : vector<1x8xf32> to vector<8x8xf32>
    %50 = arith.mulf %8, %49 : vector<8x8xf32>
    %cst_20 = arith.constant dense<0.000000e+00> : vector<8xf32>
    %51 = vector.multi_reduction <add>, %50, %cst_20 [1] : vector<8x8xf32> to vector<8xf32>
    %52 = vector.shape_cast %51 : vector<8xf32> to vector<8x1xf32>
    %53 = arith.negf %52 : vector<8x1xf32>
    %54 = math.exp %53 : vector<8x1xf32>
    %cst_21 = arith.constant 1.000000e+00 : f32
    %55 = vector.broadcast %cst_21 : f32 to vector<8x1xf32>
    %56 = arith.addf %55, %54 : vector<8x1xf32>
    %57 = arith.divf %55, %56 : vector<8x1xf32>
    %58 = vector.broadcast %57 : vector<8x1xf32> to vector<8x256xf32>
    %59 = arith.mulf %1, %58 : vector<8x256xf32>
    %c0_22 = arith.constant 0 : index
    %c0_23 = arith.constant 0 : index
    %c0_24 = arith.constant 0 : index
    %60 = vector.load %arg7[%c0_22, %c0_23, %c0_24] : memref<1x8x256xf32, #tpu.memory_space<vmem>>, vector<1x8x256xf32>
    %61 = vector.shape_cast %60 : vector<1x8x256xf32> to vector<8x256xf32>
    %62 = vector.shape_cast %59 : vector<8x256xf32> to vector<1x8x256xf32>
    tpu.vector_store %arg7[%c0_22, %c0_23, %c0_24], %62 {strides = array<i32>} : memref<1x8x256xf32, #tpu.memory_space<vmem>>, vector<1x8x256xf32>,
    return
  }
  func.func @transform_0(%arg0: i32) -> (i32, i32, i32) {
    %c0_i32 = arith.constant 0 : i32
    %c0_i32_0 = arith.constant 0 : i32
    %c0_i32_1 = arith.constant 0 : i32
    return %arg0, %c0_i32, %c0_i32_0 : i32, i32, i32
  }
  func.func @transform_1(%arg0: i32) -> (i32, i32) {
    %c0_i32 = arith.constant 0 : i32
    %c0_i32_0 = arith.constant 0 : i32
    %c0_i32_1 = arith.constant 0 : i32
    return %c0_i32, %c0_i32_0 : i32, i32
  }
  func.func @transform_2(%arg0: i32) -> (i32, i32) {
    %c0_i32 = arith.constant 0 : i32
    %c0_i32_0 = arith.constant 0 : i32
    %c0_i32_1 = arith.constant 0 : i32
    return %c0_i32, %c0_i32_0 : i32, i32
  }
  func.func @transform_3(%arg0: i32) -> (i32, i32) {
    %c0_i32 = arith.constant 0 : i32
    %c0_i32_0 = arith.constant 0 : i32
    %c0_i32_1 = arith.constant 0 : i32
    return %c0_i32, %c0_i32_0 : i32, i32
  }
  func.func @transform_4(%arg0: i32) -> (i32, i32) {
    %c0_i32 = arith.constant 0 : i32
    %c0_i32_0 = arith.constant 0 : i32
    %c0_i32_1 = arith.constant 0 : i32
    return %c0_i32, %c0_i32_0 : i32, i32
  }
  func.func @transform_5(%arg0: i32) -> i32 {
    %c0_i32 = arith.constant 0 : i32
    %c0_i32_0 = arith.constant 0 : i32
    return %c0_i32 : i32
  }
  func.func @transform_6(%arg0: i32) -> (i32, i32, i32) {
    %c0_i32 = arith.constant 0 : i32
    %c0_i32_0 = arith.constant 0 : i32
    %c0_i32_1 = arith.constant 0 : i32
    return %arg0, %c0_i32, %c0_i32_0 : i32, i32, i32
  }
}

</mosaic_0001>

<bundles_post_ra>
// kernel: tpu_custom_call.1
= control target key start
LH: loop header
LB: loop body
LE: loop exit
PB: predicated region body
PF: predicated region fallthrough
CT: control target
= control target key end

     0   :  { %s1051_s0 = inlined_call_operand.hbm [shape: f32[2,8,256], index: 0, kind: input, shape index: {}]   ;;  %s1052_s1 = inlined_call_operand.hbm [shape: f32[8,8], index: 1, kind: input, shape index: {}]   ;;  %s1053_s2 = inlined_call_operand.hbm [shape: f32[8,8], index: 2, kind: input, shape index: {}]   ;;  %s1054_s3 = inlined_call_operand.hbm [shape: f32[8,8], index: 3, kind: input, shape index: {}]   ;;  %s1055_s4 = inlined_call_operand.vmem [shape: f32[1,8], index: 4, kind: input, shape index: {}]   ;;  %s1056_s5 = inlined_call_operand.<no memory space> [shape: f32[1], index: 5, kind: input, shape index: {}]   ;;  %s1057_s6 = inlined_call_operand.hbm [shape: f32[2,8,256], index: 6, kind: output, shape index: {}]  }
   0x1   :  { %11 = sst [smem:[#allocation2]] %s1056_s5 }
   0x2   :  { %12 = vsyncpa [#allocation4], 0 }
   0x3   :  { %14 = vsyncpa [#allocation4 + $0x1], 0 }
   0x4   :  { %15 = vsyncpa [#allocation7], 0 }
   0x5   :  { %16 = vsyncpa [#allocation10], 0 }
   0x6   :  { %17 = vsyncpa [#allocation5], 0 }
   0x7   :  { %19 = vsyncpa [#allocation5 + $0x1], 0  ;;  %s842_s23 = smov 0   ;;  %s844_s24 = smov 0  }
   0x8   :  { %s846_s25 = smov 0   ;;  %s848_s26 = smov 0  }
   0x9 LB: > { %s863_s5 = sadd.s32 4294967295, %s797_s26   ;;  %s500_s27 = sadd.s32 4294967294, %s797_s26   ;;  %s797_s26 = sphi %s848_s26, %s1081_s26   ;;  %s793_s25 = sphi %s846_s25, %s1080_s25   ;;  %s789_s24 = sphi %s844_s24, %s1079_s24   ;;  %s785_s23 = sphi %s842_s23, %s1078_s23  }
   0xa   : > { %p45_p0 = scmp.ne.s32.totalorder %s789_s24, %s785_s23  ;;  %p1058_p1 = scmp.eq.s32.totalorder %s863_s5, 0 }
   0xb   : > { %p180_p3 = scmp.eq.s32.totalorder %s500_s27, 1  ;;  %p501_p5 = scmp.ge.s32.totalorder %s797_s26, 1 }
   0xc   : > { %p872_p4 = por %p1058_p1, %p45_p0  ;;  %p187_p7 = scmp.lt.s32.totalorder %s797_s26, 3 }
   0xd   : > { %p877_p6 = por %p180_p3, %p45_p0  ;;  %s799_s7 = smov [#allocation6]  }
   0xe   : > { %s1062_s28 = scalar_select %p872_p4, 1, 0 }
   0xf   : > { %s1063_s29 = scalar_select %p877_p6, 1, 0 }
  0x10   : > { %p882_p8 = pnand %p501_p5, %p187_p7  ;;  %s200_s8 = sshll.u32 %s799_s7, 4  ;;  %s201_s8 = int_to_ptr.vmem [resolvable:$true] %s200_s8 }
  0x11   : > { %s800_s9 = smov [#allocation8]   ;;  %s801_s12 = smov [#allocation9]  }
  0x12   : > { %s1064_s30 = scalar_select %p882_p8, 1, 0 }
  0x13   : > { %p542_p10 = pneg %p882_p8  ;;  %s211_s10 = sshll.u32 %s800_s9, 4  ;;  %s212_s10 = int_to_ptr.vmem [resolvable:$true] %s211_s10 }
  0x14   : > { %s222_s13 = sshll.u32 %s801_s12, 4  ;;  %s630_s14 = scalar_lea.vmem %s201_s8, 128  ;;  %s895_s13 = int_to_ptr.vmem [resolvable:$true] %s222_s13 }
  0x15   : > { %p891_p11 = pnand %p542_p10, %p1058_p1  ;;  %p631_p13 = scmp.ne.s32.totalorder %s201_s8, %s630_s14 }
  0x16   : > { %p638_p5 = scmp.lt.s32.totalorder %s201_s8, %s201_s8  ;;  %p639_p7 = scmp.lt.s32.totalorder %s630_s14, %s630_s14 }
  0x17   : > { %p621_p12 = pneg %p891_p11 }
  0x18   : > { %p640_p10 = por %p639_p7, %p638_p5 }
  0x19   : > { %p633_p0 = pnand %p631_p13, %p621_p12 }
  0x1b   : > { %p634_p3 = pneg %p633_p0 }
  0x1d   : > { %p641_p9 = pnand %p640_p10, %p634_p3 }
  0x1f   : > { %644 = shalt.err (!%p641_p9)
}
  0x20   : > { %545 = dma.hbm_to_vmem [thread:$0]  (!%p891_p11), %s1052_s1, 128, %s201_s8, [#allocation7]  }
  0x21   : > { %s656_s17 = scalar_lea.vmem %s212_s10, 128  ;;  %p664_p13 = scmp.lt.s32.totalorder %s212_s10, %s212_s10 }
  0x22   : > { %p657_p1 = scmp.ne.s32.totalorder %s212_s10, %s656_s17  ;;  %p665_p0 = scmp.lt.s32.totalorder %s656_s17, %s656_s17 }
  0x24   : > { %p659_p2 = pnand %p657_p1, %p621_p12  ;;  %p666_p4 = por %p665_p0, %p664_p13 }
  0x26   : > { %p660_p6 = pneg %p659_p2 }
  0x28   : > { %p667_p8 = pnand %p666_p4, %p660_p6 }
  0x2a   : > { %670 = shalt.err (!%p667_p8)
}
  0x2b   : > { %548 = dma.hbm_to_vmem [thread:$0]  (!%p891_p11), %s1053_s2, 128, %s212_s10, [#allocation7]  }
  0x2c   : > { %s682_s20 = scalar_lea.vmem %s895_s13, 128  ;;  %p690_p3 = scmp.lt.s32.totalorder %s895_s13, %s895_s13 }
  0x2d   : > { %p683_p9 = scmp.ne.s32.totalorder %s895_s13, %s682_s20  ;;  %p691_p4 = scmp.lt.s32.totalorder %s682_s20, %s682_s20 }
  0x2f   : > { %p685_p1 = pnand %p683_p9, %p621_p12  ;;  %p692_p6 = por %p691_p4, %p690_p3 }
  0x31   : > { %p686_p2 = pneg %p685_p1 }
  0x33   : > { %p693_p8 = pnand %p692_p6, %p686_p2 }
  0x35   : > { %696 = shalt.err (!%p693_p8)
}
  0x36   : > { %551 = dma.hbm_to_vmem [thread:$0]  (!%p891_p11), %s1054_s3, 128, %s895_s13, [#allocation10]  }
  0x37   : > { %s929_s27 = sadd.s32 1, %s797_s26   ;;  %s32_s8 = sadd.s32 1, %s793_s25 }
  0x38   : > { %s29_s7 = ssub.s32 %s797_s26, %s929_s27  ;;  %p39_p5 = scmp.ne.s32.totalorder %s793_s25, %s789_s24 }
  0x39   : > { %p30_p12 = scmp.eq.s32.totalorder %s29_s7, 0  ;;  %p40_p7 = scmp.eq.s32.totalorder %s797_s26, 0 }
  0x3a   : > { %p563_p10 = scmp.lt.s32.totalorder %s797_s26, 2  ;;  %p1066_p0 = scmp.eq.s32.totalorder %s863_s5, 1 }
  0x3b   : > { %s939_s9 = scalar_select %p30_p12, %s793_s25, %s32_s8  }
  0x3c   : > { %p41_p13 = por %p40_p7, %p39_p5  ;;  %p943_p9 = por %p1066_p0, %p39_p5 }
  0x3d   : > { %s239_s11 = sand.u32 1, %s793_s25   ;;  %s524_s12 = sshll.u32 %s797_s26, 8 }
  0x3e   : > { %s1067_s10 = scalar_select %p943_p9, 1, 0 }
  0x3f   : > { %s506_s13 = sshll.u32 %s239_s11, 4  ;;  %s952_s16 = scalar_lea.hbm %s1051_s0, %s524_s12 }
  0x40   : > { %s243_s17 = scalar_lea.vmem [#allocation3], %s506_s13  ;;  %p954_p11 = pnand %p563_p10, %p41_p13 }
  0x41   : > { %s251_s18 = sshll.u32 %s243_s17, 4  ;;  %s240_s20 = scalar_lea.sflag [#allocation4], %s239_s11  ;;  %s252_s18 = int_to_ptr.vmem [resolvable:$true] %s251_s18 }
  0x42   : > { %s697_s21 = scalar_lea.hbm %s952_s16, 256  ;;  %p699_p2 = pneg %p954_p11 }
  0x43   : > { %p698_p1 = scmp.ne.s32.totalorder %s952_s16, %s697_s21  ;;  %s702_s8 = scalar_lea.hbm %s1051_s0, 512 }
  0x44   : > { %p703_p6 = scmp.lt.s32.totalorder %s952_s16, %s1051_s0  ;;  %p704_p8 = scmp.lt.s32.totalorder %s702_s8, %s697_s21 }
  0x45   : > { %p700_p3 = pnand %p699_p2, %p698_p1 }
  0x46   : > { %p705_p12 = por %p704_p8, %p703_p6 }
  0x47   : > { %p701_p4 = pneg %p700_p3 }
  0x49   : > { %p706_p5 = pnand %p705_p12, %p701_p4 }
  0x4b   : > { %709 = shalt.err (!%p706_p5)
}
  0x4c   : > { %s710_s14 = scalar_lea.vmem %s252_s18, 256  ;;  %s802_s11 = smov [#allocation3]  }
  0x4d   : > { %p711_p7 = scmp.ne.s32.totalorder %s252_s18, %s710_s14  ;;  %s715_s15 = sshll.u32 %s802_s11, 4  ;;  %s716_s15 = int_to_ptr.vmem [resolvable:$false] %s715_s15 }
  0x4e   : > { %s717_s17 = scalar_lea.vmem %s716_s15, 512  ;;  %p718_p0 = scmp.lt.s32.totalorder %s252_s18, %s716_s15 }
  0x4f   : > { %p713_p10 = pnand %p711_p7, %p699_p2  ;;  %p719_p1 = scmp.lt.s32.totalorder %s717_s17, %s710_s14 }
  0x51   : > { %p714_p13 = pneg %p713_p10  ;;  %p720_p3 = por %p719_p1, %p718_p0 }
  0x53   : > { %p721_p9 = pnand %p720_p3, %p714_p13 }
  0x55   : > { %724 = shalt.err (!%p721_p9)
}
  0x56   : > { %555 = dma.hbm_to_vmem [thread:$0]  (!%p954_p11), %s952_s16, 256, %s252_s18, %s240_s20  }
  0x57   : > { %p1069_p4 = scmp.ne.s32.totalorder %s1064_s30, 0 }
  0x58   : > { %s975_s21 = sand.u32 (!%p1069_p4), 1, %s789_s24   ;;  %p1070_p2 = scmp.ne.s32.totalorder (!%p1069_p4), %s1062_s28, 0 }
  0x59   : > { %260 = sbr.rel (%p1069_p4) target bundleno = 628 (0x274), region = 44  ;;  %s510_s22 = sshll.u32 (!%p1069_p4), %s975_s21, 4 }
  0x5a   : > { %s263_s7 = scalar_lea.sflag (!%p1069_p4), [#allocation4], %s975_s21  ;;  %s266_s8 = scalar_lea.vmem (!%p1069_p4), [#allocation3], %s510_s22 }
  0x5e   : > { %768 = dma.done.wait (%p1070_p2), %s263_s7, 256  }
  0x5f   : > { %770 = vsyncadd (%p1070_p2), %s263_s7, 4294967040  ;;  %p1071_p9 = scmp.eq.s32.totalorder %s863_s5, 0 }
  0x61   : > { %772 = dma.done.wait (%p1071_p9), [#allocation7], 256   ;;  %p1072_p11 = pmov %p1071_p9 }
  0x62   : > { %p1073_p6 = pmov %p1071_p9 }
  0x63   : > { %774 = vsyncadd (%p1072_p11), [#allocation7], 4294967040 }
  0x64   : > { %776 = dma.done.wait (%p1073_p6), [#allocation10], 128   ;;  %p1074_p8 = pmov %p1073_p6 }
  0x65   : > { %v993_v0 = vld [vmem:[%s266_s8] sm:$0xff]  ;;  %v995_v1 = vld [vmem:[%s266_s8 + $0x8] sm:$0xff]  ;;  %vm318_vm0 = vcmask 64512   ;;  %vm338_vm1 = vcmask 57344   ;;  %s356_s16 = sld [smem:[#allocation2]]  ;;  %v368_v41 = vlaneseq  ;;  %s525_s18 = sshll.u32 %s863_s5, 8 }
  0x66   : > { %778 = vsyncadd (%p1074_p8), [#allocation10], 4294967168  ;;  %v309_v2 = vadd.f32 %v995_v1, %v993_v0  ;;  %v313_v3 = vld [vmem:[#allocation6] sm:$0xff]  ;;  %v314_v4 = vld [vmem:[#allocation8] sm:$0xff]  ;;  %s306_s19 = scalar_lea.vmem [#allocation11], %s510_s22  ;;  %s1014_s14 = scalar_lea.hbm %s1057_s6, %s525_s18 }
  0x67   : > { %v316_v21 = vld [vmem:[%s1055_s4] sm:$0x1]  ;;  %v369_v44 = vshrl.u32 %v368_v41, 7  ;;  %v315_v51 = vld [vmem:[#allocation9] sm:$0xff]  ;;  %s401_s20 = sshll.u32 %s306_s19, 4  ;;  %s387_s11 = scalar_lea.sflag [#allocation5], %s975_s21  ;;  %s402_s20 = int_to_ptr.vmem [resolvable:$true] %s401_s20 }
  0x68   : > { %310 = vadd.xlane.f32.xlu0 %v309_v2  ;;  %s725_s15 = scalar_lea.vmem %s402_s20, 256  ;;  %p1075_p5 = scmp.ne.s32.totalorder %s1067_s10, 0 }
  0x69   : > { %v370_v49 = vsub.s32 0, %v369_v44  ;;  %p726_p12 = scmp.ne.s32.totalorder %s402_s20, %s725_s15  ;;  %s803_s5 = smov [#allocation11]  }
  0x6a   : > { %s729_s17 = sshll.u32 %s803_s5, 4  ;;  %s730_s17 = int_to_ptr.vmem [resolvable:$false] %s729_s17 }
  0x6b   : > { %v357_v27 = vstv %s356_s16  ;;  %p727_p7 = pnand %p726_p12, %p1075_p5  ;;  %s731_s22 = scalar_lea.vmem %s730_s17, 512 }
  0x6c   : > { %v517_v28 = vmul.f32 -1.442695, %v357_v27  ;;  %p732_p13 = scmp.lt.s32.totalorder %s402_s20, %s730_s17  ;;  %p733_p0 = scmp.lt.s32.totalorder %s731_s22, %s725_s15 }
  0x6d   : > { %p728_p10 = pneg %p727_p7 }
  0x6e   : > { %603 = vpow2.f32 %v517_v28  ;;  %p734_p1 = por %p733_p0, %p732_p13 }
  0x70   : > { %p735_p3 = pnand %p734_p1, %p728_p10 }
  0x7b   : > { %v604_v35 = vpop.eup %603 }
  0x7c   : > { %v361_v36 = vadd.f32 1.0, %v604_v35 }
  0xf1   : > { %v311_v5 = vpop.xlane.xlu0 %310 }
  0xf2   : > { %v312_v6 = vmul.f32 0.00390625, %v311_v5 }
  0xf4   : > { %v317_v7 = vmul.f32 %v313_v3, %v312_v6  ;;  %v326_v8 = vmul.f32 %v314_v4, %v312_v6 }
  0xf6   : > { %v319_v9 = vsel %vm318_vm0, %v317_v7, 0.0  ;;  %v327_v10 = vsel %vm318_vm0, %v326_v8, 0.0 }
  0xf7   : > { %v320_v11 = vrot.slane %v319_v9, 4  ;;  %v328_v12 = vrot.slane %v327_v10, 4 }
  0xf9   : > { %v321_v13 = vadd.f32 %v320_v11, %v319_v9  ;;  %v329_v14 = vadd.f32 %v328_v12, %v327_v10 }
  0xfb   : > { %v330_v15 = vrot.slane %v329_v14, 2  ;;  %v322_v16 = vrot.slane %v321_v13, 2 }
  0xfd   : > { %v323_v17 = vadd.f32 %v322_v16, %v321_v13  ;;  %v331_v18 = vadd.f32 %v330_v15, %v329_v14 }
  0xff   : > { %v324_v19 = vrot.slane %v323_v17, 1  ;;  %v332_v20 = vrot.slane %v331_v18, 1 }
 0x101   : > { %v325_v22 = vadd.f32 %v324_v19, %v323_v17  ;;  %v333_v23 = vadd.f32 %v332_v20, %v331_v18 }
 0x103   : > { %v335_v24 = vsel %vm318_vm0, %v325_v22, 0.0  ;;  %v334_v25 = vadd.f32 %v333_v23, %v316_v21 }
 0x104   : > { %336 = vadd.xlane.f32.xlu0 %v335_v24 }
 0x105   : > { %v339_v26 = vsel %vm338_vm1, %v334_v25, 0.0 }
 0x106   : > { %340 = vadd.xlane.f32.xlu1 %v339_v26 }
 0x18d   : > { %v337_v29 = vpop.xlane.xlu0 %336 }
 0x18e   : > { %v342_v30 = vmul.f32 %v337_v29, %v334_v25 }
 0x18f   : > { %v341_v31 = vpop.xlane.xlu1 %340 }
 0x190   : > { %v515_v32 = vmul.f32 -1.442695, %v342_v30  ;;  %v349_v33 = vmul.f32 %v341_v31, %v325_v22 }
 0x192   : > { %605 = vpow2.f32 %v515_v32  ;;  %v516_v34 = vmul.f32 -1.442695, %v349_v33 }
 0x194   : > { %607 = vpow2.f32 %v516_v34 }
 0x195   : > { %609 = vrcp.f32 %v361_v36 }
 0x19f   : > { %v606_v37 = vpop.eup %605 }
 0x1a0   : > { %v346_v38 = vadd.f32 1.0, %v606_v37 }
 0x1a1   : > { %v608_v39 = vpop.eup %607 }
 0x1a2   : > { %611 = vrcp.f32 %v346_v38  ;;  %v353_v40 = vadd.f32 1.0, %v608_v39  ;;  %v610_v42 = vpop.eup %609 }
 0x1a3   : > { %v365_v43 = vsub.f32 1.0, %v610_v42 }
 0x1a4   : > { %613 = vrcp.f32 %v353_v40 }
 0x1af   : > { %v612_v45 = vpop.eup %611 }
 0x1b0   : > { %v364_v47 = vmul.f32 %v612_v45, %v610_v42 }
 0x1b1   : > { %v614_v46 = vpop.eup %613 }
 0x1b2   : > { %v366_v48 = vmul.f32 %v614_v46, %v365_v43 }
 0x1b4   : > { %v367_v50 = vadd.f32 %v366_v48, %v364_v47 }
 0x1b6   : > { %v371_v52 = vrot.slane %v367_v50, %v370_v49 }
 0x1b8   : > { %v372_v53 = vmul.f32 %v371_v52, %v315_v51 }
 0x1ba   : > { %v373_v54 = vsel %vm318_vm0, %v372_v53, 0.0 }
 0x1bb   : > { %374 = vadd.xlane.f32.xlu1 %v373_v54 }
 0x244   : > { %v375_v55 = vpop.xlane.xlu1 %374 }
 0x245   : > { %v518_v56 = vmul.f32 -1.442695, %v375_v55 }
 0x247   : > { %615 = vpow2.f32 %v518_v56 }
 0x254   : > { %v616_v57 = vpop.eup %615 }
 0x255   : > { %v379_v58 = vadd.f32 1.0, %v616_v57 }
 0x257   : > { %617 = vrcp.f32 %v379_v58 }
 0x264   : > { %v618_v59 = vpop.eup %617 }
 0x265   : > { %v382_v60 = vmul.f32 %v618_v59, %v993_v0  ;;  %v383_v61 = vmul.f32 %v618_v59, %v995_v1 }
 0x267   : > { %384 = vst [vmem:[%s306_s19] sm:$0xff] %v382_v60  ;;  %385 = vst [vmem:[%s306_s19 + $0x8] sm:$0xff] %v383_v61 }
 0x268   : > { %738 = shalt.err (!%p735_p3)
}
 0x269   : > { %s739_s7 = scalar_lea.hbm %s1014_s14, 256  ;;  %s743_s28 = scalar_lea.hbm %s1057_s6, 512 }
 0x26a   : > { %p740_p4 = scmp.ne.s32.totalorder %s1014_s14, %s739_s7  ;;  %p744_p11 = scmp.lt.s32.totalorder %s1014_s14, %s1057_s6 }
 0x26b   : > { %p745_p6 = scmp.lt.s32.totalorder %s743_s28, %s739_s7 }
 0x26c   : > { %p741_p2 = pnand %p740_p4, %p1075_p5 }
 0x26d   : > { %p746_p8 = por %p745_p6, %p744_p11 }
 0x26e   : > { %p742_p9 = pneg %p741_p2 }
 0x270   : > { %p747_p12 = pnand %p746_p8, %p742_p9 }
 0x272   : > { %750 = shalt.err (!%p747_p12)
}
 0x273   : > { %540 = dma.vmem_to_hbm [thread:$0]  (%p1075_p5), %s402_s20, 256, %s1014_s14, %s387_s11  }
 0x274 PF: > { %s413_s18 = sand.u32 1, %s785_s23   ;;  %p1076_p7 = scmp.ne.s32.totalorder %s1063_s29, 0 }
 0x275   : > { %p1077_p10 = scmp.ge.s32.totalorder %s797_s26, 2  ;;  %s414_s19 = scalar_lea.sflag [#allocation5], %s413_s18 }
 0x277   : > { %p557_p13 = pnand %p1077_p10, %p1076_p7 }
 0x279   : > { %p558_p0 = pneg %p557_p13 }
 0x27b   : > { %780 = dma.done.wait (%p558_p0), %s414_s19, 256  }
 0x27c   : > { %782 = vsyncadd (%p558_p0), %s414_s19, 4294967040  ;;  %p22_p1 = scmp.ge.s32.totalorder %s929_s27, 4   ;;  %s1078_s23 = smov %s789_s24 }
 0x27d   : > { %s1079_s24 = smov %s793_s25  ;;  %s1080_s25 = smov %s939_s9 }
 0x27e   : > { %s1081_s26 = smov %s929_s27  ;;  %24 = sbr.rel (!%p22_p1) target bundleno = 9 (0x9), region = 101 }
 0x283   :  { %419 = vsyncpa [#allocation4], 1 }
 0x284   :  { %421 = vsyncpa [#allocation4 + $0x1], 1 }
 0x285   :  { %422 = vsyncpa [#allocation7], 1 }
 0x286   :  { %423 = vsyncpa [#allocation10], 1 }
 0x287   :  { %424 = vsyncpa [#allocation5], 1 }
 0x288   :  { %426 = vsyncpa [#allocation5 + $0x1], 1 }

</bundles_post_ra>
